<compile_context>
chip_gen: v6e
topology: v6e:2x2x1
jax: 0.10.0
libtpu: 0.0.40
codegen_flags: <defaults>
</compile_context>

<pallas_src>
import functools

import jax
import jax.numpy as jnp
from jax import lax
from jax.experimental import pallas as pl
from jax.experimental.pallas import tpu as pltpu


def _round_up(x, m):
    return ((x + m - 1) // m) * m


def _vmem_budget_bytes():
    """Conservative per-step VMEM working-set budget (fits v7x's 64 MiB VMEM,
    allows bigger double-buffered tiles on v5e/v6e's 128 MiB)."""
    try:
        cap = pltpu.get_tpu_info().vmem_capacity_bytes
    except Exception:  # fall back to the smallest-generation (v7x) capacity
        cap = 64 * 1024 * 1024
    return min(cap // 3, 24 * 1024 * 1024)


def _style_loss_kernel(feats_ref, tgt_ref, g_ref, psum_ref, acc_ref, *, scale, tm):
    """One (m, k) grid step of the Gram-matrix + MSE computation.

    feats_ref : (NC, TK)       all feature rows, this K slice (compute dtype)
    tgt_ref   : (TM, NC)       pre-scaled target rows (f32)
    g_ref     : (TM, NC)       scaled Gram rows (f32 output)
    psum_ref  : (1, 8, 128)    per-row-block sum of squared error (broadcast)
    acc_ref   : (TM, NC)       f32 accumulator scratch
    """
    m = pl.program_id(0)
    k = pl.program_id(1)

    @pl.when(k == 0)
    def _init():
        acc_ref[...] = jnp.zeros_like(acc_ref)

    # LHS row block is a slice of the already-resident feats block: no second
    # HBM stream.  Start offset is a multiple of 8 (sublane aligned).
    row0 = pl.multiple_of(m * tm, 8)
    lhs = feats_ref[pl.ds(row0, tm), :]

    # Gram block: contract the TK axis of both operands (A . A^T, "NT" form),
    # accumulated in f32 on the MXU -- no explicit transpose of the VMEM tile.
    acc_ref[...] += lax.dot_general(
        lhs,
        feats_ref[...],
        dimension_numbers=(((1,), (1,)), ((), ())),
        preferred_element_type=jnp.float32,
    )

    @pl.when(k == pl.num_programs(1) - 1)
    def _finalize():
        # .div(a*b*c*d) followed by .mul_(weight), fused into one scale.
        g = acc_ref[...] * scale
        g_ref[...] = g
        diff = g - tgt_ref[...]
        # Sum of squared error for this row block; the (tiny) cross-block sum
        # and the division by NC*NC happen in the wrapper.
        psum_ref[...] = jnp.broadcast_to(jnp.sum(diff * diff), psum_ref.shape)


def gram_matrix_ref(x):
    """Pure-JAX reference GramMatrix.forward (used to build the target + checks)."""
    a, b, c, d = x.shape
    feats = x.reshape(a * b, c * d)
    return (feats @ feats.T) / (a * b * c * d)


def style_loss_forward(x, target_gram_scaled, weight, *, compute_dtype=jnp.bfloat16):
    """StyleLoss.forward: returns (output, G, loss).

    x                  : (N, C, H, W) float32
    target_gram_scaled : (N*C, N*C)   float32  -- target gram * weight (detached)
    weight             : python float
    """
    a, b, c, d = x.shape
    nc, hw = a * b, c * d
    scale = float(weight) / float(a * b * c * d)

    # ----- tiling ------------------------------------------------------------
    nc_pad = _round_up(nc, 8)
    if nc_pad > 256:
        tm = 256
        nc_pad = _round_up(nc_pad, tm)
    else:
        tm = nc_pad
    m_blocks = nc_pad // tm

    itemsize = jnp.dtype(compute_dtype).itemsize
    budget = _vmem_budget_bytes()
    # acc (f32) + double-buffered target + double-buffered G output (all f32).
    fixed = 4 * tm * nc_pad * (1 + 2 + 2)
    # double-buffered feats block per unit of TK (single shared stream).
    per_tk = 2 * nc_pad * itemsize
    tk_cap = max(128, (budget - fixed) // per_tk)
    tk = min(tk_cap, 16384, _round_up(hw, 128))
    tk = max(128, (tk // 128) * 128)
    if tk >= 1024:
        tk = (tk // 512) * 512
    hw_pad = _round_up(hw, tk)
    k_blocks = hw_pad // tk

    # Actual per-step working set -> VMEM limit with headroom.
    working_set = (4 * tm * nc_pad                 # acc scratch
                   + 2 * nc_pad * tk * itemsize    # feats (double-buffered)
                   + 2 * 2 * tm * nc_pad * 4       # tgt + G (double-buffered)
                   + 2 * 8 * 128 * 4)              # psum
    vmem_limit = int(min(100 * 1024 * 1024,
                         max(32 * 1024 * 1024, working_set + (4 << 20))))

    # ----- operand prep (zero padding is neutral for Gram sum and MSE sum) ---
    feats = x.reshape(nc, hw).astype(jnp.float32)
    feats = jnp.pad(feats, ((0, nc_pad - nc), (0, hw_pad - hw)))
    feats = feats.astype(compute_dtype)
    tgt = jnp.pad(target_gram_scaled.astype(jnp.float32),
                  ((0, nc_pad - nc), (0, nc_pad - nc)))

    kernel = functools.partial(_style_loss_kernel, scale=scale, tm=tm)

    g_pad, psum = pl.pallas_call(
        kernel,
        out_shape=(
            jax.ShapeDtypeStruct((nc_pad, nc_pad), jnp.float32),
            jax.ShapeDtypeStruct((m_blocks, 8, 128), jnp.float32),
        ),
        grid=(m_blocks, k_blocks),
        in_specs=[
            pl.BlockSpec((nc_pad, tk), lambda m, k: (0, k)),    # all feature rows, K slice
            pl.BlockSpec((tm, nc_pad), lambda m, k: (m, 0)),    # target row block
        ],
        out_specs=(
            pl.BlockSpec((tm, nc_pad), lambda m, k: (m, 0)),    # Gram row block
            pl.BlockSpec((1, 8, 128), lambda m, k: (m, 0, 0)),  # per-block SSE
        ),
        scratch_shapes=[pltpu.VMEM((tm, nc_pad), jnp.float32)],
        compiler_params=pltpu.CompilerParams(
            dimension_semantics=("parallel", "arbitrary"),
            vmem_limit_bytes=vmem_limit,
        ),
    )(feats, tgt)

    G = g_pad[:nc, :nc]
    loss = jnp.sum(psum[:, 0, 0]) / float(nc * nc)   # MSELoss mean reduction
    output = x  # input.clone() -- JAX arrays are immutable
    return output, G, loss


if __name__ == "__main__":
    key = jax.random.PRNGKey(0)
    k_in, k_tgt = jax.random.split(key)

    # Small NCHW conv-feature-map shapes consistent with the module.
    N, C, H, W = 2, 4, 16, 16
    weight = 1000.0

    x = jax.random.normal(k_in, (N, C, H, W), dtype=jnp.float32)

    # Deterministic "style target": gram of a synthetic target feature map,
    # pre-scaled by weight (matches `target.detach() * weight` in __init__).
    target_feature = jax.random.normal(k_tgt, (N, C, H, W), dtype=jnp.float32)
    target_gram_scaled = gram_matrix_ref(target_feature) * weight

    out, G, loss = style_loss_forward(x, target_gram_scaled, weight)
    jax.block_until_ready((out, G, loss))

    # --- checks ---------------------------------------------------------------
    # (1) Exact-path reference: same bf16-quantized feats, f32 accumulation.
    feats_q = x.reshape(N * C, H * W).astype(jnp.bfloat16).astype(jnp.float32)
    G_ref_q = (feats_q @ feats_q.T) / (N * C * H * W) * weight
    loss_ref_q = jnp.mean((G_ref_q - target_gram_scaled) ** 2)
    # (2) Full-f32 PyTorch-semantics reference (loose: kernel feeds the MXU bf16).
    G_ref_f32 = gram_matrix_ref(x) * weight
    loss_ref_f32 = jnp.mean((G_ref_f32 - target_gram_scaled) ** 2)

    assert out.shape == x.shape and jnp.allclose(out, x)
    assert G.shape == (N * C, N * C)
    assert jnp.allclose(G, G_ref_q, rtol=1e-4, atol=1e-2)
    assert jnp.allclose(loss, loss_ref_q, rtol=1e-3, atol=1e-2)
    assert jnp.allclose(G, G_ref_f32, rtol=5e-2, atol=1.0)
    assert jnp.allclose(loss, loss_ref_f32, rtol=1e-1)

    # TODO(synk): StyleLoss.backward (autograd through the stored loss) is not
    # implemented; only the forward pass (output, G, loss) is provided.
    print("KERNEL_OK")
</pallas_src>

<mosaic_0001>
module attributes {stable_mosaic.version = 11 : i64} {
  func.func @_style_loss_kernel(%arg0: i32, %arg1: i32, %arg2: memref<8x256xbf16, #tpu.memory_space<vmem>>, %arg3: memref<8x8xf32, #tpu.memory_space<vmem>>, %arg4: memref<8x8xf32, #tpu.memory_space<vmem>>, %arg5: memref<1x8x128xf32, #tpu.memory_space<vmem>>, %arg6: memref<8x8xf32, #tpu.memory_space<vmem>>) attributes {dimension_semantics = [#tpu.dimension_semantics<parallel>, #tpu.dimension_semantics<arbitrary>], iteration_bounds = array<i64: 1, 1>, scalar_prefetch = 0 : i64, scratch_operands = 1 : i64, tpu.core_type = #tpu.core_type<tc>, window_params = [{transform_indices = @transform_0, window_bounds = array<i64: 8, 256>}, {transform_indices = @transform_1, window_bounds = array<i64: 8, 8>}, {transform_indices = @transform_2, window_bounds = array<i64: 8, 8>}, {transform_indices = @transform_3, window_bounds = array<i64: 1, 8, 128>}]} {
    %c0_i32 = arith.constant 0 : i32
    %0 = arith.cmpi eq, %arg1, %c0_i32 : i32
    %1 = arith.extui %0 : i1 to i32
    %c0_i32_0 = arith.constant 0 : i32
    %2 = arith.cmpi ne, %1, %c0_i32_0 : i32
    scf.if %2 {
      %cst_9 = arith.constant 0.000000e+00 : f32
      %15 = vector.broadcast %cst_9 : f32 to vector<8x8xf32>
      %c0_10 = arith.constant 0 : index
      %c0_11 = arith.constant 0 : index
      %16 = vector.load %arg6[%c0_10, %c0_11] : memref<8x8xf32, #tpu.memory_space<vmem>>, vector<8x8xf32>
      tpu.vector_store %arg6[%c0_10, %c0_11], %15 {strides = array<i32>} : memref<8x8xf32, #tpu.memory_space<vmem>>, vector<8x8xf32>,
    } else {
    }
    %c8_i32 = arith.constant 8 : i32
    %3 = arith.muli %arg0, %c8_i32 : i32
    %4 = tpu.assume_multiple %3, 8 : i32
    %5 = arith.index_cast %4 : i32 to index
    %c0 = arith.constant 0 : index
    %6 = vector.load %arg2[%5, %c0] : memref<8x256xbf16, #tpu.memory_space<vmem>>, vector<8x256xbf16>
    %c0_1 = arith.constant 0 : index
    %c0_2 = arith.constant 0 : index
    %7 = vector.load %arg6[%c0_1, %c0_2] : memref<8x8xf32, #tpu.memory_space<vmem>>, vector<8x8xf32>
    %c0_3 = arith.constant 0 : index
    %c0_4 = arith.constant 0 : index
    %8 = vector.load %arg2[%c0_3, %c0_4] : memref<8x256xbf16, #tpu.memory_space<vmem>>, vector<8x256xbf16>
    %cst = arith.constant dense<0.000000e+00> : vector<8x8xf32>
    %9 = tpu.matmul %6, %8, %cst {dimension_numbers = #tpu.dot_dimension_numbers<[1], [1], [0], [0], [0, 0, 1, 0], [], []>} : vector<8x256xbf16>, vector<8x256xbf16>, vector<8x8xf32> -> vector<8x8xf32>
    %10 = arith.addf %7, %9 : vector<8x8xf32>
    %c0_5 = arith.constant 0 : index
    %c0_6 = arith.constant 0 : index
    %11 = vector.load %arg6[%c0_5, %c0_6] : memref<8x8xf32, #tpu.memory_space<vmem>>, vector<8x8xf32>
    tpu.vector_store %arg6[%c0_5, %c0_6], %10 {strides = array<i32>} : memref<8x8xf32, #tpu.memory_space<vmem>>, vector<8x8xf32>,
    %c0_i32_7 = arith.constant 0 : i32
    %12 = arith.cmpi eq, %arg1, %c0_i32_7 : i32
    %13 = arith.extui %12 : i1 to i32
    %c0_i32_8 = arith.constant 0 : i32
    %14 = arith.cmpi ne, %13, %c0_i32_8 : i32
    scf.if %14 {
      %c0_9 = arith.constant 0 : index
      %c0_10 = arith.constant 0 : index
      %15 = vector.load %arg6[%c0_9, %c0_10] : memref<8x8xf32, #tpu.memory_space<vmem>>, vector<8x8xf32>
      %cst_11 = arith.constant 0.48828125 : f32
      %16 = vector.broadcast %cst_11 : f32 to vector<8x8xf32>
      %17 = arith.mulf %15, %16 : vector<8x8xf32>
      %c0_12 = arith.constant 0 : index
      %c0_13 = arith.constant 0 : index
      %18 = vector.load %arg4[%c0_12, %c0_13] : memref<8x8xf32, #tpu.memory_space<vmem>>, vector<8x8xf32>
      tpu.vector_store %arg4[%c0_12, %c0_13], %17 {strides = array<i32>} : memref<8x8xf32, #tpu.memory_space<vmem>>, vector<8x8xf32>,
      %c0_14 = arith.constant 0 : index
      %c0_15 = arith.constant 0 : index
      %19 = vector.load %arg3[%c0_14, %c0_15] : memref<8x8xf32, #tpu.memory_space<vmem>>, vector<8x8xf32>
      %20 = arith.subf %17, %19 : vector<8x8xf32>
      %21 = arith.mulf %20, %20 : vector<8x8xf32>
      %22 = vector.shape_cast %21 : vector<8x8xf32> to vector<1x8x8xf32>
      %cst_16 = arith.constant dense<0.000000e+00> : vector<1xf32>
      %23 = vector.multi_reduction <add>, %22, %cst_16 [1, 2] : vector<1x8x8xf32> to vector<1xf32>
      %24 = vector.shape_cast %23 : vector<1xf32> to vector<1x1x1xf32>
      %25 = vector.extract %24[0, 0, 0] : f32 from vector<1x1x1xf32>
      %26 = vector.broadcast %25 : f32 to vector<1x8x128xf32>
      %c0_17 = arith.constant 0 : index
      %c0_18 = arith.constant 0 : index
      %c0_19 = arith.constant 0 : index
      %27 = vector.load %arg5[%c0_17, %c0_18, %c0_19] : memref<1x8x128xf32, #tpu.memory_space<vmem>>, vector<1x8x128xf32>
      tpu.vector_store %arg5[%c0_17, %c0_18, %c0_19], %26 {strides = array<i32>} : memref<1x8x128xf32, #tpu.memory_space<vmem>>, vector<1x8x128xf32>,
    } else {
    }
    return
  }
  func.func @transform_0(%arg0: i32, %arg1: i32) -> (i32, i32) {
    %c0_i32 = arith.constant 0 : i32
    %c0_i32_0 = arith.constant 0 : i32
    return %c0_i32, %arg1 : i32, i32
  }
  func.func @transform_1(%arg0: i32, %arg1: i32) -> (i32, i32) {
    %c0_i32 = arith.constant 0 : i32
    %c0_i32_0 = arith.constant 0 : i32
    return %arg0, %c0_i32 : i32, i32
  }
  func.func @transform_2(%arg0: i32, %arg1: i32) -> (i32, i32) {
    %c0_i32 = arith.constant 0 : i32
    %c0_i32_0 = arith.constant 0 : i32
    return %arg0, %c0_i32 : i32, i32
  }
  func.func @transform_3(%arg0: i32, %arg1: i32) -> (i32, i32, i32) {
    %c0_i32 = arith.constant 0 : i32
    %c0_i32_0 = arith.constant 0 : i32
    %c0_i32_1 = arith.constant 0 : i32
    return %arg0, %c0_i32, %c0_i32_0 : i32, i32, i32
  }
}

</mosaic_0001>

<bundles_post_ra>
// kernel: tpu_custom_call.1
= control target key start
LH: loop header
LB: loop body
LE: loop exit
PB: predicated region body
PF: predicated region fallthrough
CT: control target
= control target key end

     0   :  { %9 = vsyncpa [#allocation4], 0  ;;  %s307_s0 = inlined_call_operand.hbm [shape: bf16[8,256], index: 0, kind: input, shape index: {}]   ;;  %s308_s1 = inlined_call_operand.hbm [shape: f32[8,8], index: 1, kind: input, shape index: {}]   ;;  %s309_s2 = inlined_call_operand.hbm [shape: f32[8,8], index: 2, kind: output, shape index: {0}]   ;;  %s310_s3 = inlined_call_operand.hbm [shape: f32[1,8,128], index: 3, kind: output, shape index: {1}]  }
   0x1   :  { %10 = vsyncpa [#allocation7], 0 }
   0x2   :  { %11 = vsyncpa [#allocation5], 0 }
   0x3   :  { %12 = vsyncpa [#allocation10], 0  ;;  %s266_s12 = smov [#allocation3]   ;;  %s267_s14 = smov [#allocation6]  }
   0x4   :  { %s19_s13 = sshll.u32 %s266_s12, 4  ;;  %s29_s15 = sshll.u32 %s267_s14, 4  ;;  %s20_s13 = int_to_ptr.vmem [resolvable:$true] %s19_s13  ;;  %s30_s15 = int_to_ptr.vmem [resolvable:$true] %s29_s15 }
   0x5   :  { %s186_s16 = scalar_lea.vmem %s20_s13, 128  ;;  %p191_p1 = scmp.lt.s32.totalorder %s20_s13, %s20_s13 }
   0x6   :  { %p187_p0 = scmp.ne.s32.totalorder %s20_s13, %s186_s16  ;;  %p192_p2 = scmp.lt.s32.totalorder %s186_s16, %s186_s16 }
   0x8   :  { %p193_p3 = por %p192_p2, %p191_p1 }
   0xa   :  { %p194_p4 = pnand %p193_p3, %p187_p0 }
   0xc   :  { %197 = shalt.err (!%p194_p4)
}
   0xd   :  { %22 = dma.hbm_to_vmem [thread:$0]  %s307_s0, 128, %s20_s13, [#allocation4]  }
   0xe   :  { %s206_s19 = scalar_lea.vmem %s30_s15, 128  ;;  %p211_p6 = scmp.lt.s32.totalorder %s30_s15, %s30_s15 }
   0xf   :  { %p207_p5 = scmp.ne.s32.totalorder %s30_s15, %s206_s19  ;;  %p212_p7 = scmp.lt.s32.totalorder %s206_s19, %s206_s19 }
  0x11   :  { %p213_p8 = por %p212_p7, %p211_p6 }
  0x13   :  { %p214_p9 = pnand %p213_p8, %p207_p5 }
  0x15   :  { %217 = shalt.err (!%p214_p9)
}
  0x16   :  { %32 = dma.hbm_to_vmem [thread:$0]  %s308_s1, 128, %s30_s15, [#allocation7]  }
  0x17   :  { %258 = dma.done.wait [#allocation4], 128  }
  0x18   :  { %259 = vsyncadd [#allocation4], 4294967168 }
  0x19   :  { %260 = dma.done.wait [#allocation7], 128  }
  0x1a   :  { %261 = vsyncadd [#allocation7], 4294967168  ;;  %vm44_vm0 = vcmask 64512   ;;  %v268_v0 = vmov 0.0   ;;  %v54_v1 = vld [vmem:[#allocation3] sm:$0xff]  ;;  %v118_v11 = vld [vmem:[#allocation6] sm:$0xff] }
  0x1b   :  { %45 = vst.msk [vmem:[#allocation2] sm:$0xff] %vm44_vm0, %v268_v0  ;;  %v168_v2 = vcombine.high %v54_v1, %v54_v1  ;;  %v167_v3 = vcombine.low %v54_v1, %v54_v1  ;;  %s269_s0 = smov [#allocation8]  }
  0x1c   :  { %s139_s1 = sshll.u32 %s269_s0, 4  ;;  %s140_s1 = int_to_ptr.vmem [resolvable:$true] %s139_s1 }
  0x1d   :  { %83 = vmatprep.subr.bf16.mxu0 %v168_v2  ;;  %101 = vmatprep.mubr.bf16.mxu0 %v168_v2  ;;  %s218_s22 = scalar_lea.vmem %s140_s1, 128  ;;  %p223_p11 = scmp.lt.s32.totalorder %s140_s1, %s140_s1 }
  0x1e   :  { %84 = vmatpush1.bf16.xpose.msra.mxu0 %v167_v3  ;;  %p219_p10 = scmp.ne.s32.totalorder %s140_s1, %s218_s22  ;;  %p224_p12 = scmp.lt.s32.totalorder %s218_s22, %s218_s22 }
  0x20   :  { %p225_p13 = por %p224_p12, %p223_p11 }
  0x22   :  { %v53_v4 = vld [vmem:[#allocation2] sm:$0xff]  ;;  %p226_p0 = pnand %p225_p13, %p219_p10 }
  0x25   :  { %102 = vmatmul.mubr.bf16.vlgmr.msra.gmra.mxu0 %v167_v3 }
  0xe5   :  { %v103_v5 = vpop.f32.mrf.mxu0 }
  0xe6   :  { %v109_v6 = vadd.f32 %v103_v5, %v53_v4 }
  0xe7   :  { %v105_v7 = vpop.f32.mrf.mxu0 }
  0xe8   :  { %111 = vst.msk [vmem:[#allocation2] sm:$0xff] %vm44_vm0, %v109_v6 }
  0xe9   :  { %v106_v8 = vpop.f32.mrf.mxu0 }
  0xeb   :  { %v107_v9 = vpop.f32.mrf.mxu0 }
  0xef   :  { %v115_v10 = vld [vmem:[#allocation2] sm:$0xff] }
  0xf0   :  { %v116_v12 = vmul.f32 0.48828125, %v115_v10 }
  0xf2   :  { %v119_v13 = vsub.f32 %v116_v12, %v118_v11  ;;  %117 = vst.msk [vmem:[#allocation8] sm:$0xff] %vm44_vm0, %v116_v12 }
  0xf4   :  { %v120_v14 = vmul.f32 %v119_v13, %v119_v13 }
  0xf6   :  { %v121_v15 = vsel %vm44_vm0, %v120_v14, 0.0 }
  0xf7   :  { %122 = vadd.xlane.f32.xlu0 %v121_v15 }
  0xf8   :  { %229 = shalt.err (!%p226_p0)
}
  0xf9   :  { %142 = dma.vmem_to_hbm [thread:$0]  %s140_s1, 128, %s309_s2, [#allocation5]  }
  0xfa   :  { %s270_s25 = smov [#allocation9]  }
  0xfb   :  { %s149_s26 = sshll.u32 %s270_s25, 4  ;;  %s150_s26 = int_to_ptr.vmem [resolvable:$true] %s149_s26 }
  0xfc   :  { %s238_s28 = scalar_lea.vmem %s150_s26, 128  ;;  %p243_p2 = scmp.lt.s32.totalorder %s150_s26, %s150_s26 }
  0xfd   :  { %p239_p1 = scmp.ne.s32.totalorder %s150_s26, %s238_s28  ;;  %p244_p3 = scmp.lt.s32.totalorder %s238_s28, %s238_s28 }
  0xff   :  { %p245_p4 = por %p244_p3, %p243_p2 }
 0x101   :  { %p246_p5 = pnand %p245_p4, %p239_p1 }
 0x180   :  { %v123_v16 = vpop.xlane.xlu0 %122 }
 0x181   :  { %v124_v17 = vrot.slane %v123_v16, 4 }
 0x183   :  { %v125_v18 = vadd.f32 %v124_v17, %v123_v16 }
 0x185   :  { %v126_v19 = vrot.slane %v125_v18, 2 }
 0x187   :  { %v127_v20 = vadd.f32 %v126_v19, %v125_v18 }
 0x189   :  { %v128_v21 = vrot.slane %v127_v20, 1 }
 0x18b   :  { %v129_v22 = vadd.f32 %v128_v21, %v127_v20 }
 0x18d   :  { %169 = vpush %v129_v22 }
 0x1be   :  { %s170_s27 = spop %169 }
 0x1bf   :  { %v131_v23 = vstv %s170_s27 }
 0x1c0   :  { %132 = vst [vmem:[#allocation9] sm:$0xff] %v131_v23 }
 0x1c1   :  { %249 = shalt.err (!%p246_p5)
}
 0x1c2   :  { %152 = dma.vmem_to_hbm [thread:$0]  %s150_s26, 128, %s310_s3, [#allocation10]  }
 0x1c3   :  { %262 = dma.done.wait [#allocation5], 128  }
 0x1c4   :  { %263 = vsyncadd [#allocation5], 4294967168 }
 0x1c5   :  { %264 = dma.done.wait [#allocation10], 128  }
 0x1c6   :  { %265 = vsyncadd [#allocation10], 4294967168 }
 0x1c7   :  { %159 = vsyncpa [#allocation4], 1 }
 0x1c8   :  { %160 = vsyncpa [#allocation7], 1 }
 0x1c9   :  { %161 = vsyncpa [#allocation5], 1 }
 0x1ca   :  { %162 = vsyncpa [#allocation10], 1 }

</bundles_post_ra>
